<compile_context>
chip_gen: v7x
topology: tpu7x:2x2x1
jax: 0.10.0
libtpu: 0.0.40
codegen_flags: <defaults>
</compile_context>

<pallas_src>
import functools

import jax
import jax.numpy as jnp
from jax.experimental import pallas as pl
from jax.experimental.pallas import tpu as pltpu


def _spatial_attn_kernel(rc_ref, w_ref, b_ref, x_ref, out_ref, attn_ref, *,
                         C, H, W, KS, pad, Bt):
    # rc_ref:   VMEM (2, H*W) int32   row/col id of each flat pixel (masking)
    # w_ref:    VMEM (KS*KS, C, 1) f32 BN-folded conv weights, one (C,1) col/tap
    # b_ref:    SMEM (1,) f32          BN-folded bias
    # x_ref:    VMEM (Bt, C, H*W)      lane-dense input block
    # out_ref:  VMEM (Bt, C, H*W)      gated output
    # attn_ref: VMEM (Bt, 1, H*W)      attention map
    HW = H * W
    row = rc_ref[0:1, :]                      # (1, HW) int32
    col = rc_ref[1:2, :]                      # (1, HW) int32
    bias = b_ref[0]

    # Precompute per-tap (shift, boundary mask, (C,1) weight) once per grid step;
    # masks/weights are image-invariant so they are hoisted out of the image loop.
    taps = []
    for kh in range(KS):
        dh = kh - pad
        for kw in range(KS):
            dw = kw - pad
            shift = dh * W + dw
            conds = []
            if dh > 0:
                conds.append(row < H - dh)
            elif dh < 0:
                conds.append(row >= -dh)
            if dw > 0:
                conds.append(col < W - dw)
            elif dw < 0:
                conds.append(col >= -dw)
            mask = functools.reduce(lambda a, b: a & b, conds) if conds else None
            taps.append((shift, mask, w_ref[kh * KS + kw]))       # w tap: (C, 1)

    def process_image(bt):
        xf = x_ref[bt].astype(jnp.float32)                        # (C, HW)
        acc = jnp.zeros((C, HW), jnp.float32)
        for shift, mask, w_tap in taps:
            if shift == 0:
                shifted = xf
            else:
                # shifted[f] = xf[f + shift] (cyclic); wraps are zeroed by mask.
                shifted = pltpu.roll(xf, shift=(-shift) % HW, axis=1)
            if mask is not None:
                shifted = jnp.where(mask, shifted, 0.0)
            acc = acc + shifted * w_tap                           # (C,1) lane-bcast
        conv = jnp.sum(acc, axis=0, keepdims=True)                # (1, HW) C-reduce
        attn = jax.nn.sigmoid(conv + bias)                        # EUP
        attn_ref[bt] = attn.astype(attn_ref.dtype)
        out_ref[bt] = (xf * attn).astype(out_ref.dtype)           # sublane-bcast gate

    if Bt <= 8:                         # unrolled: LLO sees the whole body
        for bt in range(Bt):
            process_image(bt)
    else:                               # large blocks: bound live ranges
        def body(bt, carry):
            process_image(bt)
            return carry
        jax.lax.fori_loop(0, Bt, body, 0)


def _pick_batch_tile(B, bytes_per_image, target_bytes=1 << 20):
    """Largest divisor of B whose x-block fits ~target, keeping >=2 grid steps."""
    bt = 1
    for d in range(1, B + 1):
        if B % d == 0 and d * bytes_per_image <= target_bytes:
            bt = d
    while bt > 1 and (B // bt) < 2:     # keep pipeline depth / both v7x cores busy
        bt -= 1
        while B % bt != 0:
            bt -= 1
    return bt


def spatial_attention(x, conv_w, bn_gamma, bn_beta, bn_mean, bn_var, eps=1e-5):
    """x: (B, C, H, W); conv_w: (1, C, KS, KS). Returns (x * xc, xc)."""
    B, C, H, W = x.shape
    out_ch, Cw, KS, KS2 = conv_w.shape
    assert out_ch == 1 and Cw == C and KS == KS2
    pad = (KS - 1) // 2
    HW = H * W

    # Fold BatchNorm (inference / running stats) into the conv.
    scale = bn_gamma / jnp.sqrt(bn_var + eps)                       # (1,)
    w_folded = (conv_w[0] * scale[0]).astype(jnp.float32)           # (C, KS, KS)
    b_folded = (bn_beta - bn_mean * scale).reshape(-1).astype(jnp.float32)

    # (KS*KS, C, 1): one (C, 1) weight column per tap (lane-broadcast in kernel).
    w_taps = jnp.transpose(w_folded, (1, 2, 0)).reshape(KS * KS, C, 1)

    # Flat-index row/col ids (avoids in-kernel integer div/mod).
    fidx = jnp.arange(HW, dtype=jnp.int32)
    rc = jnp.stack([fidx // W, fidx % W], axis=0)                   # (2, HW)

    x_flat = x.reshape(B, C, HW)                                    # lane-dense view

    itemsize = x.dtype.itemsize
    Bt = _pick_batch_tile(B, C * HW * itemsize)
    grid = (B // Bt,)

    # Derive the VMEM request from actual block sizes; cap at 48 MiB (v7x-safe).
    x_blk = Bt * C * HW * itemsize
    attn_blk = Bt * HW * itemsize
    aux = rc.size * 4 + w_taps.size * 4 + 4
    needed = 2 * (2 * x_blk + attn_blk + aux)        # double-buffered streams
    vmem_limit = int(min(48 * 1024 * 1024, max(2 * needed, 16 * 1024 * 1024)))

    kernel = functools.partial(_spatial_attn_kernel, C=C, H=H, W=W, KS=KS,
                               pad=pad, Bt=Bt)

    out, attn = pl.pallas_call(
        kernel,
        out_shape=(jax.ShapeDtypeStruct((B, C, HW), x.dtype),
                   jax.ShapeDtypeStruct((B, 1, HW), x.dtype)),
        grid=grid,
        in_specs=[
            pl.BlockSpec((2, HW), lambda i: (0, 0)),                # row/col ids
            pl.BlockSpec((KS * KS, C, 1), lambda i: (0, 0, 0)),     # folded weights
            pl.BlockSpec(memory_space=pltpu.MemorySpace.SMEM),      # folded bias
            pl.BlockSpec((Bt, C, HW), lambda i: (i, 0, 0)),         # x
        ],
        out_specs=(
            pl.BlockSpec((Bt, C, HW), lambda i: (i, 0, 0)),         # x * xc
            pl.BlockSpec((Bt, 1, HW), lambda i: (i, 0, 0)),         # xc
        ),
        compiler_params=pltpu.CompilerParams(
            dimension_semantics=("parallel",),
            vmem_limit_bytes=vmem_limit),
    )(rc, w_taps, b_folded, x_flat)

    return out.reshape(B, C, H, W), attn.reshape(B, 1, H, W)


def _reference(x, conv_w, gamma, beta, mean, var, eps=1e-5):
    KS = conv_w.shape[-1]
    pad = (KS - 1) // 2
    xc = jax.lax.conv_general_dilated(
        x, conv_w, window_strides=(1, 1),
        padding=((pad, pad), (pad, pad)),
        dimension_numbers=("NCHW", "OIHW", "NCHW"))
    xc = ((xc - mean[None, :, None, None])
          / jnp.sqrt(var[None, :, None, None] + eps)
          * gamma[None, :, None, None] + beta[None, :, None, None])
    xc = jax.nn.sigmoid(xc)
    return x * xc, xc


if __name__ == "__main__":
    B, C, H, W = 2, 4, 16, 16
    KS = 3

    key = jax.random.PRNGKey(0)
    k_x, k_w = jax.random.split(key)
    x = jax.random.normal(k_x, (B, C, H, W), dtype=jnp.float32)

    # Deterministic synthetic parameters (no checkpoint loading).
    conv_w = 0.1 * jax.random.normal(k_w, (1, C, KS, KS), dtype=jnp.float32)
    bn_gamma = jnp.array([1.5], dtype=jnp.float32)
    bn_beta = jnp.array([0.1], dtype=jnp.float32)
    bn_mean = jnp.array([0.05], dtype=jnp.float32)
    bn_var = jnp.array([0.8], dtype=jnp.float32)

    out, attn = spatial_attention(x, conv_w, bn_gamma, bn_beta, bn_mean, bn_var)
    jax.block_until_ready(out)
    jax.block_until_ready(attn)

    ref_out, ref_attn = _reference(x, conv_w, bn_gamma, bn_beta, bn_mean, bn_var)
    assert out.shape == (B, C, H, W) and attn.shape == (B, 1, H, W)
    assert jnp.allclose(out, ref_out, atol=1e-5, rtol=1e-5)
    assert jnp.allclose(attn, ref_attn, atol=1e-5, rtol=1e-5)

    print("KERNEL_OK")
</pallas_src>

<mosaic_0001>
module attributes {stable_mosaic.version = 11 : i64} {
  func.func @_spatial_attn_kernel(%arg0: i32, %arg1: memref<2x256xi32, #tpu.memory_space<vmem>>, %arg2: memref<9x4x1xf32, #tpu.memory_space<vmem>>, %arg3: memref<1xf32, #tpu.memory_space<smem>>, %arg4: memref<1x4x256xf32, #tpu.memory_space<vmem>>, %arg5: memref<1x4x256xf32, #tpu.memory_space<vmem>>, %arg6: memref<1x1x256xf32, #tpu.memory_space<vmem>>) attributes {dimension_semantics = [#tpu.dimension_semantics<parallel>], iteration_bounds = array<i64: 2>, scalar_prefetch = 0 : i64, scratch_operands = 0 : i64, tpu.core_type = #tpu.core_type<tc>, window_params = [{pipeline_mode = #tpu.pipeline_mode<synchronous>, transform_indices = @transform_0, window_bounds = array<i64: 2, 256>}, {pipeline_mode = #tpu.pipeline_mode<synchronous>, transform_indices = @transform_1, window_bounds = array<i64: 9, 4, 1>}, {transform_indices = @transform_2, window_bounds = array<i64: 1>}, {transform_indices = @transform_3, window_bounds = array<i64: 1, 4, 256>}, {transform_indices = @transform_4, window_bounds = array<i64: 1, 4, 256>}, {transform_indices = @transform_5, window_bounds = array<i64: 1, 1, 256>}]} {
    %c0 = arith.constant 0 : index
    %c0_0 = arith.constant 0 : index
    %0 = vector.load %arg1[%c0, %c0_0] : memref<2x256xi32, #tpu.memory_space<vmem>>, vector<1x256xi32>
    %c1 = arith.constant 1 : index
    %c0_1 = arith.constant 0 : index
    %1 = vector.load %arg1[%c1, %c0_1] : memref<2x256xi32, #tpu.memory_space<vmem>>, vector<1x256xi32>
    %c0_2 = arith.constant 0 : index
    %2 = memref.load %arg3[%c0_2] : memref<1xf32, #tpu.memory_space<smem>>
    %c1_i32 = arith.constant 1 : i32
    %3 = vector.broadcast %c1_i32 : i32 to vector<1x256xi32>
    %4 = arith.cmpi sge, %0, %3 : vector<1x256xi32>
    %c1_i32_3 = arith.constant 1 : i32
    %5 = vector.broadcast %c1_i32_3 : i32 to vector<1x256xi32>
    %6 = arith.cmpi sge, %1, %5 : vector<1x256xi32>
    %7 = arith.andi %4, %6 : vector<1x256xi1>
    %c0_4 = arith.constant 0 : index
    %c0_5 = arith.constant 0 : index
    %c0_6 = arith.constant 0 : index
    %8 = vector.load %arg2[%c0_4, %c0_5, %c0_6] : memref<9x4x1xf32, #tpu.memory_space<vmem>>, vector<1x4x1xf32>
    %9 = vector.shape_cast %8 : vector<1x4x1xf32> to vector<4x1xf32>
    %c1_i32_7 = arith.constant 1 : i32
    %10 = vector.broadcast %c1_i32_7 : i32 to vector<1x256xi32>
    %11 = arith.cmpi sge, %0, %10 : vector<1x256xi32>
    %c1_8 = arith.constant 1 : index
    %c0_9 = arith.constant 0 : index
    %c0_10 = arith.constant 0 : index
    %12 = vector.load %arg2[%c1_8, %c0_9, %c0_10] : memref<9x4x1xf32, #tpu.memory_space<vmem>>, vector<1x4x1xf32>
    %13 = vector.shape_cast %12 : vector<1x4x1xf32> to vector<4x1xf32>
    %c1_i32_11 = arith.constant 1 : i32
    %14 = vector.broadcast %c1_i32_11 : i32 to vector<1x256xi32>
    %15 = arith.cmpi sge, %0, %14 : vector<1x256xi32>
    %c15_i32 = arith.constant 15 : i32
    %16 = vector.broadcast %c15_i32 : i32 to vector<1x256xi32>
    %17 = arith.cmpi slt, %1, %16 : vector<1x256xi32>
    %18 = arith.andi %15, %17 : vector<1x256xi1>
    %c2 = arith.constant 2 : index
    %c0_12 = arith.constant 0 : index
    %c0_13 = arith.constant 0 : index
    %19 = vector.load %arg2[%c2, %c0_12, %c0_13] : memref<9x4x1xf32, #tpu.memory_space<vmem>>, vector<1x4x1xf32>
    %20 = vector.shape_cast %19 : vector<1x4x1xf32> to vector<4x1xf32>
    %c1_i32_14 = arith.constant 1 : i32
    %21 = vector.broadcast %c1_i32_14 : i32 to vector<1x256xi32>
    %22 = arith.cmpi sge, %1, %21 : vector<1x256xi32>
    %c3 = arith.constant 3 : index
    %c0_15 = arith.constant 0 : index
    %c0_16 = arith.constant 0 : index
    %23 = vector.load %arg2[%c3, %c0_15, %c0_16] : memref<9x4x1xf32, #tpu.memory_space<vmem>>, vector<1x4x1xf32>
    %24 = vector.shape_cast %23 : vector<1x4x1xf32> to vector<4x1xf32>
    %c4 = arith.constant 4 : index
    %c0_17 = arith.constant 0 : index
    %c0_18 = arith.constant 0 : index
    %25 = vector.load %arg2[%c4, %c0_17, %c0_18] : memref<9x4x1xf32, #tpu.memory_space<vmem>>, vector<1x4x1xf32>
    %26 = vector.shape_cast %25 : vector<1x4x1xf32> to vector<4x1xf32>
    %c15_i32_19 = arith.constant 15 : i32
    %27 = vector.broadcast %c15_i32_19 : i32 to vector<1x256xi32>
    %28 = arith.cmpi slt, %1, %27 : vector<1x256xi32>
    %c5 = arith.constant 5 : index
    %c0_20 = arith.constant 0 : index
    %c0_21 = arith.constant 0 : index
    %29 = vector.load %arg2[%c5, %c0_20, %c0_21] : memref<9x4x1xf32, #tpu.memory_space<vmem>>, vector<1x4x1xf32>
    %30 = vector.shape_cast %29 : vector<1x4x1xf32> to vector<4x1xf32>
    %c15_i32_22 = arith.constant 15 : i32
    %31 = vector.broadcast %c15_i32_22 : i32 to vector<1x256xi32>
    %32 = arith.cmpi slt, %0, %31 : vector<1x256xi32>
    %c1_i32_23 = arith.constant 1 : i32
    %33 = vector.broadcast %c1_i32_23 : i32 to vector<1x256xi32>
    %34 = arith.cmpi sge, %1, %33 : vector<1x256xi32>
    %35 = arith.andi %32, %34 : vector<1x256xi1>
    %c6 = arith.constant 6 : index
    %c0_24 = arith.constant 0 : index
    %c0_25 = arith.constant 0 : index
    %36 = vector.load %arg2[%c6, %c0_24, %c0_25] : memref<9x4x1xf32, #tpu.memory_space<vmem>>, vector<1x4x1xf32>
    %37 = vector.shape_cast %36 : vector<1x4x1xf32> to vector<4x1xf32>
    %c15_i32_26 = arith.constant 15 : i32
    %38 = vector.broadcast %c15_i32_26 : i32 to vector<1x256xi32>
    %39 = arith.cmpi slt, %0, %38 : vector<1x256xi32>
    %c7 = arith.constant 7 : index
    %c0_27 = arith.constant 0 : index
    %c0_28 = arith.constant 0 : index
    %40 = vector.load %arg2[%c7, %c0_27, %c0_28] : memref<9x4x1xf32, #tpu.memory_space<vmem>>, vector<1x4x1xf32>
    %41 = vector.shape_cast %40 : vector<1x4x1xf32> to vector<4x1xf32>
    %c15_i32_29 = arith.constant 15 : i32
    %42 = vector.broadcast %c15_i32_29 : i32 to vector<1x256xi32>
    %43 = arith.cmpi slt, %0, %42 : vector<1x256xi32>
    %c15_i32_30 = arith.constant 15 : i32
    %44 = vector.broadcast %c15_i32_30 : i32 to vector<1x256xi32>
    %45 = arith.cmpi slt, %1, %44 : vector<1x256xi32>
    %46 = arith.andi %43, %45 : vector<1x256xi1>
    %c8 = arith.constant 8 : index
    %c0_31 = arith.constant 0 : index
    %c0_32 = arith.constant 0 : index
    %47 = vector.load %arg2[%c8, %c0_31, %c0_32] : memref<9x4x1xf32, #tpu.memory_space<vmem>>, vector<1x4x1xf32>
    %48 = vector.shape_cast %47 : vector<1x4x1xf32> to vector<4x1xf32>
    %c0_33 = arith.constant 0 : index
    %c0_34 = arith.constant 0 : index
    %c0_35 = arith.constant 0 : index
    %49 = vector.load %arg4[%c0_33, %c0_34, %c0_35] : memref<1x4x256xf32, #tpu.memory_space<vmem>>, vector<1x4x256xf32>
    %50 = vector.shape_cast %49 : vector<1x4x256xf32> to vector<4x256xf32>
    %cst = arith.constant 0.000000e+00 : f32
    %51 = vector.broadcast %cst : f32 to vector<4x256xf32>
    %c17_i32 = arith.constant 17 : i32
    %52 = tpu.dynamic_rotate %50 by %c17_i32 dim 1 : vector<4x256xf32>, i32 -> vector<4x256xf32>
    %cst_36 = arith.constant 0.000000e+00 : f32
    %53 = vector.shape_cast %7 : vector<1x256xi1> to vector<1x256xi1>
    %54 = vector.broadcast %53 : vector<1x256xi1> to vector<4x256xi1>
    %55 = vector.broadcast %cst_36 : f32 to vector<4x256xf32>
    %56 = arith.select %54, %52, %55 : vector<4x256xi1>, vector<4x256xf32>
    %57 = vector.broadcast %9 : vector<4x1xf32> to vector<4x256xf32>
    %58 = arith.mulf %56, %57 : vector<4x256xf32>
    %59 = arith.addf %51, %58 : vector<4x256xf32>
    %c16_i32 = arith.constant 16 : i32
    %60 = tpu.dynamic_rotate %50 by %c16_i32 dim 1 : vector<4x256xf32>, i32 -> vector<4x256xf32>
    %cst_37 = arith.constant 0.000000e+00 : f32
    %61 = vector.shape_cast %11 : vector<1x256xi1> to vector<1x256xi1>
    %62 = vector.broadcast %61 : vector<1x256xi1> to vector<4x256xi1>
    %63 = vector.broadcast %cst_37 : f32 to vector<4x256xf32>
    %64 = arith.select %62, %60, %63 : vector<4x256xi1>, vector<4x256xf32>
    %65 = vector.broadcast %13 : vector<4x1xf32> to vector<4x256xf32>
    %66 = arith.mulf %64, %65 : vector<4x256xf32>
    %67 = arith.addf %59, %66 : vector<4x256xf32>
    %c15_i32_38 = arith.constant 15 : i32
    %68 = tpu.dynamic_rotate %50 by %c15_i32_38 dim 1 : vector<4x256xf32>, i32 -> vector<4x256xf32>
    %cst_39 = arith.constant 0.000000e+00 : f32
    %69 = vector.shape_cast %18 : vector<1x256xi1> to vector<1x256xi1>
    %70 = vector.broadcast %69 : vector<1x256xi1> to vector<4x256xi1>
    %71 = vector.broadcast %cst_39 : f32 to vector<4x256xf32>
    %72 = arith.select %70, %68, %71 : vector<4x256xi1>, vector<4x256xf32>
    %73 = vector.broadcast %20 : vector<4x1xf32> to vector<4x256xf32>
    %74 = arith.mulf %72, %73 : vector<4x256xf32>
    %75 = arith.addf %67, %74 : vector<4x256xf32>
    %c1_i32_40 = arith.constant 1 : i32
    %76 = tpu.dynamic_rotate %50 by %c1_i32_40 dim 1 : vector<4x256xf32>, i32 -> vector<4x256xf32>
    %cst_41 = arith.constant 0.000000e+00 : f32
    %77 = vector.shape_cast %22 : vector<1x256xi1> to vector<1x256xi1>
    %78 = vector.broadcast %77 : vector<1x256xi1> to vector<4x256xi1>
    %79 = vector.broadcast %cst_41 : f32 to vector<4x256xf32>
    %80 = arith.select %78, %76, %79 : vector<4x256xi1>, vector<4x256xf32>
    %81 = vector.broadcast %24 : vector<4x1xf32> to vector<4x256xf32>
    %82 = arith.mulf %80, %81 : vector<4x256xf32>
    %83 = arith.addf %75, %82 : vector<4x256xf32>
    %84 = vector.broadcast %26 : vector<4x1xf32> to vector<4x256xf32>
    %85 = arith.mulf %50, %84 : vector<4x256xf32>
    %86 = arith.addf %83, %85 : vector<4x256xf32>
    %c255_i32 = arith.constant 255 : i32
    %87 = tpu.dynamic_rotate %50 by %c255_i32 dim 1 : vector<4x256xf32>, i32 -> vector<4x256xf32>
    %cst_42 = arith.constant 0.000000e+00 : f32
    %88 = vector.shape_cast %28 : vector<1x256xi1> to vector<1x256xi1>
    %89 = vector.broadcast %88 : vector<1x256xi1> to vector<4x256xi1>
    %90 = vector.broadcast %cst_42 : f32 to vector<4x256xf32>
    %91 = arith.select %89, %87, %90 : vector<4x256xi1>, vector<4x256xf32>
    %92 = vector.broadcast %30 : vector<4x1xf32> to vector<4x256xf32>
    %93 = arith.mulf %91, %92 : vector<4x256xf32>
    %94 = arith.addf %86, %93 : vector<4x256xf32>
    %c241_i32 = arith.constant 241 : i32
    %95 = tpu.dynamic_rotate %50 by %c241_i32 dim 1 : vector<4x256xf32>, i32 -> vector<4x256xf32>
    %cst_43 = arith.constant 0.000000e+00 : f32
    %96 = vector.shape_cast %35 : vector<1x256xi1> to vector<1x256xi1>
    %97 = vector.broadcast %96 : vector<1x256xi1> to vector<4x256xi1>
    %98 = vector.broadcast %cst_43 : f32 to vector<4x256xf32>
    %99 = arith.select %97, %95, %98 : vector<4x256xi1>, vector<4x256xf32>
    %100 = vector.broadcast %37 : vector<4x1xf32> to vector<4x256xf32>
    %101 = arith.mulf %99, %100 : vector<4x256xf32>
    %102 = arith.addf %94, %101 : vector<4x256xf32>
    %c240_i32 = arith.constant 240 : i32
    %103 = tpu.dynamic_rotate %50 by %c240_i32 dim 1 : vector<4x256xf32>, i32 -> vector<4x256xf32>
    %cst_44 = arith.constant 0.000000e+00 : f32
    %104 = vector.shape_cast %39 : vector<1x256xi1> to vector<1x256xi1>
    %105 = vector.broadcast %104 : vector<1x256xi1> to vector<4x256xi1>
    %106 = vector.broadcast %cst_44 : f32 to vector<4x256xf32>
    %107 = arith.select %105, %103, %106 : vector<4x256xi1>, vector<4x256xf32>
    %108 = vector.broadcast %41 : vector<4x1xf32> to vector<4x256xf32>
    %109 = arith.mulf %107, %108 : vector<4x256xf32>
    %110 = arith.addf %102, %109 : vector<4x256xf32>
    %c239_i32 = arith.constant 239 : i32
    %111 = tpu.dynamic_rotate %50 by %c239_i32 dim 1 : vector<4x256xf32>, i32 -> vector<4x256xf32>
    %cst_45 = arith.constant 0.000000e+00 : f32
    %112 = vector.shape_cast %46 : vector<1x256xi1> to vector<1x256xi1>
    %113 = vector.broadcast %112 : vector<1x256xi1> to vector<4x256xi1>
    %114 = vector.broadcast %cst_45 : f32 to vector<4x256xf32>
    %115 = arith.select %113, %111, %114 : vector<4x256xi1>, vector<4x256xf32>
    %116 = vector.broadcast %48 : vector<4x1xf32> to vector<4x256xf32>
    %117 = arith.mulf %115, %116 : vector<4x256xf32>
    %118 = arith.addf %110, %117 : vector<4x256xf32>
    %cst_46 = arith.constant dense<0.000000e+00> : vector<256xf32>
    %119 = vector.multi_reduction <add>, %118, %cst_46 [0] : vector<4x256xf32> to vector<256xf32>
    %120 = vector.shape_cast %119 : vector<256xf32> to vector<1x256xf32>
    %121 = vector.broadcast %2 : f32 to vector<1x256xf32>
    %122 = arith.addf %120, %121 : vector<1x256xf32>
    %123 = arith.negf %122 : vector<1x256xf32>
    %124 = math.exp %123 : vector<1x256xf32>
    %cst_47 = arith.constant 1.000000e+00 : f32
    %125 = vector.broadcast %cst_47 : f32 to vector<1x256xf32>
    %126 = arith.addf %125, %124 : vector<1x256xf32>
    %127 = arith.divf %125, %126 : vector<1x256xf32>
    %c0_48 = arith.constant 0 : index
    %c0_49 = arith.constant 0 : index
    %c0_50 = arith.constant 0 : index
    %128 = vector.load %arg6[%c0_48, %c0_49, %c0_50] : memref<1x1x256xf32, #tpu.memory_space<vmem>>, vector<1x1x256xf32>
    %129 = vector.shape_cast %128 : vector<1x1x256xf32> to vector<1x256xf32>
    %130 = vector.shape_cast %127 : vector<1x256xf32> to vector<1x1x256xf32>
    tpu.vector_store %arg6[%c0_48, %c0_49, %c0_50], %130 {strides = array<i32>} : memref<1x1x256xf32, #tpu.memory_space<vmem>>, vector<1x1x256xf32>,
    %131 = vector.broadcast %127 : vector<1x256xf32> to vector<4x256xf32>
    %132 = arith.mulf %50, %131 : vector<4x256xf32>
    %c0_51 = arith.constant 0 : index
    %c0_52 = arith.constant 0 : index
    %c0_53 = arith.constant 0 : index
    %133 = vector.load %arg5[%c0_51, %c0_52, %c0_53] : memref<1x4x256xf32, #tpu.memory_space<vmem>>, vector<1x4x256xf32>
    %134 = vector.shape_cast %133 : vector<1x4x256xf32> to vector<4x256xf32>
    %135 = vector.shape_cast %132 : vector<4x256xf32> to vector<1x4x256xf32>
    tpu.vector_store %arg5[%c0_51, %c0_52, %c0_53], %135 {strides = array<i32>} : memref<1x4x256xf32, #tpu.memory_space<vmem>>, vector<1x4x256xf32>,
    return
  }
  func.func @transform_0(%arg0: i32) -> (i32, i32) {
    %c0_i32 = arith.constant 0 : i32
    %c0_i32_0 = arith.constant 0 : i32
    %c0_i32_1 = arith.constant 0 : i32
    return %c0_i32, %c0_i32_0 : i32, i32
  }
  func.func @transform_1(%arg0: i32) -> (i32, i32, i32) {
    %c0_i32 = arith.constant 0 : i32
    %c0_i32_0 = arith.constant 0 : i32
    %c0_i32_1 = arith.constant 0 : i32
    %c0_i32_2 = arith.constant 0 : i32
    return %c0_i32, %c0_i32_0, %c0_i32_1 : i32, i32, i32
  }
  func.func @transform_2(%arg0: i32) -> i32 {
    %c0_i32 = arith.constant 0 : i32
    %c0_i32_0 = arith.constant 0 : i32
    return %c0_i32 : i32
  }
  func.func @transform_3(%arg0: i32) -> (i32, i32, i32) {
    %c0_i32 = arith.constant 0 : i32
    %c0_i32_0 = arith.constant 0 : i32
    %c0_i32_1 = arith.constant 0 : i32
    return %arg0, %c0_i32, %c0_i32_0 : i32, i32, i32
  }
  func.func @transform_4(%arg0: i32) -> (i32, i32, i32) {
    %c0_i32 = arith.constant 0 : i32
    %c0_i32_0 = arith.constant 0 : i32
    %c0_i32_1 = arith.constant 0 : i32
    return %arg0, %c0_i32, %c0_i32_0 : i32, i32, i32
  }
  func.func @transform_5(%arg0: i32) -> (i32, i32, i32) {
    %c0_i32 = arith.constant 0 : i32
    %c0_i32_0 = arith.constant 0 : i32
    %c0_i32_1 = arith.constant 0 : i32
    return %arg0, %c0_i32, %c0_i32_0 : i32, i32, i32
  }
}

</mosaic_0001>

<bundles_post_ra>
// kernel: tpu_custom_call.1
= control target key start
LH: loop header
LB: loop body
LE: loop exit
PB: predicated region body
PF: predicated region fallthrough
CT: control target
= control target key end

     0   :  { %s1341_s0 = inlined_call_operand.vmem [shape: s32[2,256], index: 0, kind: input, shape index: {}]   ;;  %s1342_s1 = inlined_call_operand.vmem [shape: f32[9,4,1], index: 1, kind: input, shape index: {}]   ;;  %s1343_s2 = inlined_call_operand.<no memory space> [shape: f32[1], index: 2, kind: input, shape index: {}]   ;;  %s1344_s3 = inlined_call_operand.vmem [shape: f32[2,4,256], index: 3, kind: input, shape index: {}]   ;;  %s1345_s4 = inlined_call_operand.hbm [shape: f32[2,4,256], index: 4, kind: output, shape index: {0}]   ;;  %s1346_s5 = inlined_call_operand.hbm [shape: f32[2,1,256], index: 5, kind: output, shape index: {1}]  }
   0x1   :  { %11 = sst [smem:[#allocation2]] %s1343_s2 }
   0x2   :  { %12 = vsyncpa [#allocation4], 0 }
   0x3   :  { %14 = vsyncpa [#allocation4 + $0x1], 0 }
   0x4   :  { %15 = vsyncpa [#allocation6], 0 }
   0x5   :  { %17 = vsyncpa [#allocation6 + $0x1], 0  ;;  %s939_s20 = smov 0   ;;  %s941_s21 = smov 0  }
   0x6   :  { %s943_s22 = smov 0   ;;  %s945_s23 = smov 0  }
   0x7 LB: > { %s960_s2 = sadd.s32 4294967295, %s891_s23   ;;  %s701_s24 = sadd.s32 4294967294, %s891_s23   ;;  %s891_s23 = sphi %s945_s23, %s1382_s23   ;;  %s887_s22 = sphi %s943_s22, %s1381_s22   ;;  %s883_s21 = sphi %s941_s21, %s1380_s21   ;;  %s879_s20 = sphi %s939_s20, %s1379_s20  }
   0x8   : > { %s964_s25 = sadd.s32 1, %s891_s23   ;;  %s119_s26 = sadd.s32 1, %s887_s22 }
   0x9   : > { %s116_s27 = ssub.s32 %s891_s23, %s964_s25  ;;  %p129_p0 = scmp.ne.s32.totalorder %s887_s22, %s883_s21 }
   0xa   : > { %p117_p1 = scmp.eq.s32.totalorder %s116_s27, 0  ;;  %p130_p2 = scmp.eq.s32.totalorder %s960_s2, 1 }
   0xb   : > { %p135_p3 = scmp.ne.s32.totalorder %s883_s21, %s879_s20  ;;  %p136_p4 = scmp.eq.s32.totalorder %s701_s24, 1 }
   0xc   : > { %s975_s28 = scalar_select %p117_p1, %s887_s22, %s119_s26  }
   0xd   : > { %p977_p5 = por %p130_p2, %p129_p0  ;;  %p981_p6 = por %p136_p4, %p135_p3 }
   0xe   : > { %p704_p7 = scmp.ge.s32.totalorder %s891_s23, 1  ;;  %p197_p8 = scmp.lt.s32.totalorder %s891_s23, 3 }
  0x10   : > { %p198_p9 = pnand %p704_p7, %p197_p8 }
  0x11   : > { %v711_v0 = vld [vmem:[%s1342_s1 + $0x8] sm:$0xf] (!%p198_p9)  ;;  %v242_v1 = vld [vmem:[%s1342_s1] sm:$0xf] (!%p198_p9)  ;;  %p230_p10 = scmp.lt.s32.totalorder (!%p198_p9), %s960_s2, 1  ;;  %v893_v2 = vmov (!%p198_p9), 0   ;;  %v272_v20 = vlaneseq (!%p198_p9) }
  0x12   : > { %201 = sbr.rel (%p198_p9) target bundleno = 285 (0x11d), region = 36  ;;  %787 = vset.pattern.permute.xlu1 (!%p198_p9), %v893_v2  ;;  %786 = vset.pattern.permute.xlu0 (!%p198_p9), %v893_v2  ;;  %v713_v3 = vld [vmem:[%s1342_s1 + $0x10] sm:$0xf] (!%p198_p9)  ;;  %v710_v4 = vld [vmem:[%s1342_s1 + $0x4] sm:$0xf] (!%p198_p9)  ;;  %s894_s26 = smov (!%p198_p9), 17  }
  0x13   : > { %350 = vperm.xlu1 (!%p198_p9), %787, %v711_v0   ;;  %292 = vperm.xlu0 (!%p198_p9), %786, %v242_v1   ;;  %v712_v5 = vld [vmem:[%s1342_s1 + $0xc] sm:$0xf] (!%p198_p9)  ;;  %s895_s27 = smov (!%p198_p9), 16   ;;  %s896_s6 = smov (!%p198_p9), 15   ;;  %v714_v8 = vld [vmem:[%s1342_s1 + $0x14] sm:$0xf] (!%p198_p9) }
  0x14   : > { %s897_s9 = smov (!%p198_p9), 1   ;;  %v716_v9 = vld [vmem:[%s1342_s1 + $0x1c] sm:$0xf] (!%p198_p9)  ;;  %v715_v10 = vld [vmem:[%s1342_s1 + $0x18] sm:$0xf] (!%p198_p9)  ;;  %s898_s14 = smov (!%p198_p9), 127  }
  0x15   : > { %v717_v11 = vld [vmem:[%s1342_s1 + $0x20] sm:$0xf] (!%p198_p9)  ;;  %s899_s17 = smov (!%p198_p9), 113   ;;  %s901_s19 = smov (!%p198_p9), 111   ;;  %v1056_v23 = vshrl.u32 (!%p198_p9), %v272_v20, 7  ;;  %v1072_v30 = vand.u32 (!%p198_p9), 127, %v272_v20 }
  0x16   : > { %v1046_v18 = vld [vmem:[%s1341_s0] ss:$2 sm:$0x3] (!%p198_p9)  ;;  %v1051_v19 = vld [vmem:[%s1341_s0 + $0x1] ss:$2 sm:$0x3] (!%p198_p9) }
  0x17   : > { %388 = vperm.xlu1 (!%p198_p9), %787, %v713_v3   ;;  %321 = vperm.xlu0 (!%p198_p9), %786, %v710_v4   ;;  %vm239_vm0 = vcmp.ge.s32.totalorder (!%p198_p9), %v1046_v18, 1  ;;  %vm240_vm1 = vcmp.ge.s32.totalorder (!%p198_p9), %v1051_v19, 1  ;;  %vm245_vm3 = vcmp.lt.s32.totalorder (!%p198_p9), %v1051_v19, 15  ;;  %v1062_v24 = vsub.s32 (!%p198_p9), 0, %v1056_v23  ;;  %s238_s7 = sld [smem:[#allocation2]] (!%p198_p9)  ;;  %s1247_s8 = sand.u32 (!%p198_p9), 1, %s883_s21  }
  0x18   : > { %vm241_vm2 = vmand (!%p198_p9), %vm239_vm0, %vm240_vm1  ;;  %v1065_v25 = vsub.s32 (!%p198_p9), 1, %v1056_v23  ;;  %v306_v29 = vsel (!%p198_p9), %vm239_vm0, 1, %v893_v2  ;;  %v902_v31 = vmov (!%p198_p9), 839922192   ;;  %v364_v40 = vsel (!%p198_p9), %vm240_vm1, 1, %v893_v2  ;;  %s729_s11 = sshll.u32 (!%p198_p9), %s960_s2, 7 }
  0x19   : > { %s231_s10 = scalar_select %p230_p10, %s960_s2, 1  ;;  %v277_v28 = vsel %vm241_vm2, 1, %v893_v2  ;;  %vm246_vm4 = vmand %vm239_vm0, %vm245_vm3  ;;  %v391_v32 = vunpack.c.l.s4 %v902_v31  ;;  %v310_v38 = vrot.slane %v306_v29, %v1062_v24  ;;  %vm303_vm5 = vcmp.lt.s32.totalorder %v1072_v30, 16 }
  0x1a   : > { %v281_v33 = vrot.slane %v277_v28, %v1062_v24  ;;  %v285_v34 = vrot.slane %v277_v28, %v1065_v25  ;;  %v335_v36 = vsel %vm246_vm4, 1, %v893_v2  ;;  %v314_v39 = vrot.slane %v306_v29, %v1065_v25 }
  0x1b   : > { %s728_s15 = sshll.u32 %s231_s10, 3  ;;  %379 = vperm.xlu0 %786, %v712_v5   ;;  %v339_v41 = vrot.slane %v335_v36, %v1062_v24  ;;  %v343_v42 = vrot.slane %v335_v36, %v1065_v25  ;;  %v392_v43 = vunpack.c.0.s8 %v391_v32  ;;  %vm274_vm6 = vcmp.lt.s32.totalorder %v1072_v30, 17  ;;  %s706_s10 = sshll.u32 %s1247_s8, 1 }
  0x1c   : > { %s234_s18 = scalar_lea.vmem %s1344_s3, %s728_s15  ;;  %vm1088_vm7 = vcmp.eq.s32.totalorder %v281_v33, 1  ;;  %vm1092_vm8 = vcmp.eq.s32.totalorder %v285_v34, 1  ;;  %vm1096_vm9 = vcmp.eq.s32.totalorder %v310_v38, 1  ;;  %vm1100_vm10 = vcmp.eq.s32.totalorder %v314_v39, 1  ;;  %s1254_s15 = scalar_lea.vmem [#allocation5], %s706_s10 }
  0x1d   : > { %v1009_v6 = vld [vmem:[%s234_s18] sm:$0xff]  ;;  %s900_s18 = smov 112   ;;  %vm332_vm11 = vcmp.lt.s32.totalorder %v1072_v30, 15  ;;  %v368_v50 = vrot.slane %v364_v40, %v1062_v24  ;;  %v372_v53 = vrot.slane %v364_v40, %v1065_v25  ;;  %vm255_vm12 = vcmp.lt.s32.totalorder %v1046_v18, 15  ;;  %s610_s16 = sshll.u32 %s1254_s15, 4  ;;  %s1275_s16 = int_to_ptr.vmem [resolvable:$true] %s610_s16 }
  0x1e   : > { %268 = vrot.lane.b32.xlu1 %v1009_v6, %s894_s26  ;;  %v266_v7 = vcombine.high %v1009_v6, %v1009_v6  ;;  %vm1108_vm13 = vcmp.eq.s32.totalorder %v339_v41, 1  ;;  %vm1112_vm14 = vcmp.eq.s32.totalorder %v343_v42, 1  ;;  %vm361_vm15 = vcmp.lt.s32.totalorder %v1072_v30, 1  ;;  %vm256_vm2 = vmand %vm255_vm12, %vm240_vm1 }
  0x1f   : > { %v411_v56 = vsel %vm245_vm3, 1, %v893_v2  ;;  %v395_v63 = vsub.s32 %v392_v43, %v1056_v23  ;;  %vm1133_vm0 = vcmp.eq.s32.totalorder %v368_v50, 1  ;;  %vm1141_vm4 = vcmp.eq.s32.totalorder %v372_v53, 1 }
  0x20   : > { %270 = vrot.lane.b32.xlu0 %v266_v7, %s894_s26  ;;  %v440_v29 = vsel %vm256_vm2, 1, %v893_v2  ;;  %vm408_vm1 = vcmp.lt.s32.totalorder %v1072_v30, 127  ;;  %v469_v40 = vsel %vm255_vm12, 1, %v893_v2  ;;  %v535_v49 = vstv %s238_s7  ;;  %s904_s7 = smov [#allocation3]  }
  0x21   : > { %v448_v39 = vrot.slane %v440_v29, %v1065_v25  ;;  %vm1266_vm2 = vcmp.lt.s32.totalorder %v272_v20, 256 }
  0x22   : > { %299 = vrot.lane.b32.xlu1 %v1009_v6, %s895_s27 }
  0x24   : > { %301 = vrot.lane.b32.xlu0 %v266_v7, %s895_s27  ;;  %s577_s27 = scalar_lea.sflag [#allocation4], %s1247_s8 }
  0x26   : > { %328 = vrot.lane.b32.xlu1 %v1009_v6, %s896_s6 }
  0x28   : > { %330 = vrot.lane.b32.xlu0 %v266_v7, %s896_s6 }
  0x2a   : > { %426 = vperm.xlu1 %787, %v714_v8   ;;  %v415_v8 = vrot.slane %v411_v56, %v1062_v24 }
  0x2c   : > { %357 = vrot.lane.b32.xlu0 %v1009_v6, %s897_s9 }
  0x2e   : > { %359 = vrot.lane.b32.xlu1 %v266_v7, %s897_s9  ;;  %s705_s9 = sshll.u32 %s1247_s8, 3 }
  0x2f   : > { %s222_s12 = scalar_lea.vmem [#allocation3], %s705_s9  ;;  %s801_s9 = sshll.u32 %s904_s7, 4  ;;  %s802_s9 = int_to_ptr.vmem [resolvable:$false] %s801_s9 }
  0x30   : > { %455 = vperm.xlu0 %786, %v715_v10   ;;  %s596_s13 = sshll.u32 %s222_s12, 4  ;;  %s803_s10 = scalar_lea.vmem %s802_s9, 256  ;;  %s1263_s13 = int_to_ptr.vmem [resolvable:$true] %s596_s13 }
  0x31   : > { %s797_s6 = scalar_lea.vmem %s1263_s13, 128  ;;  %p804_p0 = scmp.lt.s32.totalorder %s1263_s13, %s802_s9 }
  0x32   : > { %484 = vperm.xlu1 %787, %v716_v9   ;;  %p798_p11 = scmp.ne.s32.totalorder %s1263_s13, %s797_s6  ;;  %p805_p1 = scmp.lt.s32.totalorder %s803_s10, %s797_s6 }
  0x34   : > { %404 = vrot.lane.b32.xlu0 %v1009_v6, %s898_s14  ;;  %p799_p12 = pnand %p798_p11, %p977_p5  ;;  %p806_p2 = por %p805_p1, %p804_p0 }
  0x36   : > { %406 = vrot.lane.b32.xlu1 %v266_v7, %s898_s14  ;;  %s730_s14 = sshll.u32 %s960_s2, 5  ;;  %p800_p13 = pneg %p799_p12 }
  0x37   : > { %s1273_s26 = scalar_lea.hbm %s1346_s5, %s730_s14 }
  0x38   : > { %513 = vperm.xlu0 %786, %v717_v11   ;;  %p807_p3 = pnand %p806_p2, %p800_p13 }
  0x3a   : > { %433 = vrot.lane.b32.xlu1 %v1009_v6, %s899_s17 }
  0x3c   : > { %435 = vrot.lane.b32.xlu0 %v266_v7, %s899_s17 }
  0x3e   : > { %462 = vrot.lane.b32.xlu1 %v1009_v6, %s900_s18 }
  0x40   : > { %464 = vrot.lane.b32.xlu0 %v266_v7, %s900_s18 }
  0x42   : > { %491 = vrot.lane.b32.xlu1 %v1009_v6, %s901_s19 }
  0x44   : > { %493 = vrot.lane.b32.xlu0 %v266_v7, %s901_s19  ;;  %s1261_s19 = scalar_lea.hbm %s1345_s4, %s729_s11 }
  0x92   : > { %v1033_v12 = vpop.permute.xlu1 %350  ;;  %v1035_v13 = vpop.permute.xlu0 %292 }
  0x96   : > { %v1037_v14 = vpop.permute.xlu1 %388  ;;  %v1039_v15 = vpop.permute.xlu0 %321 }
  0x97   : > { %v396_v31 = vrot.slane %v1037_v14, %v395_v63  ;;  %v444_v14 = vrot.slane %v440_v29, %v1062_v24 }
  0x99   : > { %v398_v18 = vmul.f32 %v396_v31, %v1009_v6 }
  0x9a   : > { %v1041_v16 = vpop.permute.xlu0 %379  ;;  %v269_v17 = vpop.permute.xlu1 %268 }
  0x9b   : > { %v400_v63 = vcombine.high %v398_v18, %v398_v18 }
  0x9e   : > { %v300_v21 = vpop.permute.xlu1 %299  ;;  %v271_v22 = vpop.permute.xlu0 %270 }
  0x9f   : > { %v275_v57 = vsel %vm274_vm6, %v269_v17, %v271_v22  ;;  %v276_v58 = vsel %vm274_vm6, %v271_v22, %v269_v17  ;;  %vm261_vm6 = vmand %vm255_vm12, %vm245_vm3  ;;  %vm437_vm3 = vcmp.lt.s32.totalorder %v1072_v30, 113 }
  0xa0   : > { %v288_v9 = vsel %vm1088_vm7, %v276_v58, 0.0  ;;  %v289_v10 = vsel %vm1092_vm8, %v275_v57, 0.0  ;;  %vm1194_vm8 = vcmp.eq.s32.totalorder %v444_v14, 1 }
  0xa1   : > { %v295_v34 = vmul.f32 %v1035_v13, %v288_v9 }
  0xa2   : > { %v329_v26 = vpop.permute.xlu1 %328  ;;  %v302_v27 = vpop.permute.xlu0 %301 }
  0xa3   : > { %v304_v51 = vsel %vm303_vm5, %v300_v21, %v302_v27  ;;  %v305_v52 = vsel %vm303_vm5, %v302_v27, %v300_v21  ;;  %v419_v27 = vrot.slane %v411_v56, %v1065_v25  ;;  %vm1168_vm5 = vcmp.eq.s32.totalorder %v415_v8, 1 }
  0xa4   : > { %v317_v0 = vsel %vm1096_vm9, %v305_v52, 0.0  ;;  %v318_v1 = vsel %vm1100_vm10, %v304_v51, 0.0  ;;  %vm1198_vm9 = vcmp.eq.s32.totalorder %v448_v39, 1  ;;  %v473_v51 = vrot.slane %v469_v40, %v1062_v24 }
  0xa5   : > { %v324_v21 = vmul.f32 %v1039_v15, %v317_v0  ;;  %v325_v22 = vmul.f32 %v1039_v15, %v318_v1  ;;  %v296_v15 = vmul.f32 %v1035_v13, %v289_v10  ;;  %vm1183_vm7 = vcmp.eq.s32.totalorder %v419_v27, 1 }
  0xa6   : > { %v331_v37 = vpop.permute.xlu0 %330  ;;  %v477_v52 = vrot.slane %v469_v40, %v1065_v25  ;;  %vm466_vm10 = vcmp.lt.s32.totalorder %v1072_v30, 112 }
  0xa7   : > { %v333_v59 = vsel %vm332_vm11, %v329_v26, %v331_v37  ;;  %v334_v60 = vsel %vm332_vm11, %v331_v37, %v329_v26  ;;  %v326_v13 = vadd.f32 %v324_v21, %v295_v34  ;;  %v327_v41 = vadd.f32 %v325_v22, %v296_v15 }
  0xa8   : > { %v346_v11 = vsel %vm1108_vm13, %v334_v60, 0.0  ;;  %v347_v17 = vsel %vm1112_vm14, %v333_v59, 0.0  ;;  %vm1221_vm11 = vcmp.eq.s32.totalorder %v473_v51, 1  ;;  %vm1225_vm12 = vcmp.eq.s32.totalorder %v477_v52, 1 }
  0xa9   : > { %v1076_v35 = vpop.permute.xlu1 %426  ;;  %v353_v36 = vmul.f32 %v1033_v12, %v346_v11  ;;  %v354_v37 = vmul.f32 %v1033_v12, %v347_v17  ;;  %vm495_vm13 = vcmp.lt.s32.totalorder %v1072_v30, 111 }
  0xaa   : > { %v358_v47 = vpop.permute.xlu0 %357 }
  0xab   : > { %v356_v48 = vadd.f32 %v354_v37, %v327_v41 }
  0xad   : > { %v360_v46 = vpop.permute.xlu1 %359 }
  0xae   : > { %v362_v5 = vsel %vm361_vm15, %v358_v47, %v360_v46  ;;  %v363_v7 = vsel %vm361_vm15, %v360_v46, %v358_v47  ;;  %v355_v47 = vadd.f32 %v353_v36, %v326_v13 }
  0xaf   : > { %v1126_v62 = vpop.permute.xlu0 %455  ;;  %v375_v32 = vsel %vm1133_vm0, %v363_v7, 0.0  ;;  %v376_v33 = vsel %vm1141_vm4, %v362_v5, 0.0  ;;  %vm520_vm0 = vcmask 1043456  }
  0xb0   : > { %v382_v12 = vmul.f32 %v1041_v16, %v375_v32  ;;  %v383_v42 = vmul.f32 %v1041_v16, %v376_v33  ;;  %v498_v16 = vsel %vm261_vm6, 1, %v893_v2 }
  0xb1   : > { %v1124_v61 = vpop.permute.xlu1 %484  ;;  %v502_v60 = vrot.slane %v498_v16, %v1062_v24  ;;  %v506_v3 = vrot.slane %v498_v16, %v1065_v25 }
  0xb2   : > { %v384_v53 = vadd.f32 %v382_v12, %v355_v47  ;;  %v385_v54 = vadd.f32 %v383_v42, %v356_v48 }
  0xb3   : > { %v405_v28 = vpop.permute.xlu0 %404  ;;  %vm507_vm14 = vcmp.eq.s32.totalorder %v502_v60, 1  ;;  %vm508_vm15 = vcmp.eq.s32.totalorder %v506_v3, 1 }
  0xb4   : > { %v402_v24 = vadd.f32 %v398_v18, %v384_v53  ;;  %v403_v9 = vadd.f32 %v400_v63, %v385_v54 }
  0xb5   : > { %v407_v26 = vpop.permute.xlu1 %406 }
  0xb6   : > { %v409_v46 = vsel %vm408_vm1, %v405_v28, %v407_v26  ;;  %v410_v19 = vsel %vm408_vm1, %v407_v26, %v405_v28 }
  0xb7   : > { %v514_v43 = vpop.permute.xlu0 %513  ;;  %v422_v55 = vsel %vm1168_vm5, %v409_v46, 0.0  ;;  %v423_v2 = vsel %vm1183_vm7, %v410_v19, 0.0 }
  0xb8   : > { %v429_v4 = vmul.f32 %v1076_v35, %v422_v55  ;;  %v430_v5 = vmul.f32 %v1076_v35, %v423_v2 }
  0xb9   : > { %v434_v44 = vpop.permute.xlu1 %433 }
  0xba   : > { %v431_v27 = vadd.f32 %v429_v4, %v402_v24  ;;  %v432_v28 = vadd.f32 %v430_v5, %v403_v9 }
  0xbb   : > { %v436_v56 = vpop.permute.xlu0 %435 }
  0xbc   : > { %v438_v58 = vsel %vm437_vm3, %v434_v44, %v436_v56  ;;  %v439_v59 = vsel %vm437_vm3, %v436_v56, %v434_v44 }
  0xbd   : > { %v463_v57 = vpop.permute.xlu1 %462  ;;  %v451_v0 = vsel %vm1194_vm8, %v438_v58, 0.0  ;;  %v452_v1 = vsel %vm1198_vm9, %v439_v59, 0.0  ;;  %v903_v58 = vmov 1966171168  }
  0xbe   : > { %v458_v11 = vmul.f32 %v1126_v62, %v451_v0  ;;  %v459_v25 = vmul.f32 %v1126_v62, %v452_v1  ;;  %v554_v59 = vunpack.c.l.s4 %v903_v58 }
  0xbf   : > { %v465_v10 = vpop.permute.xlu0 %464 }
  0xc0   : > { %v467_v35 = vsel %vm466_vm10, %v463_v57, %v465_v10  ;;  %v468_v17 = vsel %vm466_vm10, %v465_v10, %v463_v57  ;;  %v460_v32 = vadd.f32 %v458_v11, %v431_v27  ;;  %v461_v33 = vadd.f32 %v459_v25, %v432_v28 }
  0xc1   : > { %v480_v21 = vsel %vm1221_vm11, %v467_v35, 0.0  ;;  %v481_v22 = vsel %vm1225_vm12, %v468_v17, 0.0  ;;  %v492_v26 = vpop.permute.xlu1 %491  ;;  %v555_v60 = vunpack.c.0.s8 %v554_v59 }
  0xc2   : > { %v487_v29 = vmul.f32 %v1124_v61, %v480_v21  ;;  %v488_v62 = vmul.f32 %v1124_v61, %v481_v22 }
  0xc3   : > { %v494_v31 = vpop.permute.xlu0 %493  ;;  %v558_v0 = vsub.s32 %v555_v60, %v1056_v23 }
  0xc4   : > { %v496_v34 = vsel %vm495_vm13, %v492_v26, %v494_v31  ;;  %v497_v15 = vsel %vm495_vm13, %v494_v31, %v492_v26  ;;  %v489_v38 = vadd.f32 %v487_v29, %v460_v32  ;;  %v490_v14 = vadd.f32 %v488_v62, %v461_v33 }
  0xc5   : > { %v509_v36 = vsel %vm507_vm14, %v496_v34, 0.0  ;;  %v510_v37 = vsel %vm508_vm15, %v497_v15, 0.0 }
  0xc6   : > { %v516_v39 = vmul.f32 %v514_v43, %v509_v36  ;;  %v517_v40 = vmul.f32 %v514_v43, %v510_v37 }
  0xc8   : > { %v518_v13 = vadd.f32 %v516_v39, %v489_v38  ;;  %v519_v41 = vadd.f32 %v517_v40, %v490_v14 }
  0xca   : > { %v521_v12 = vsel %vm520_vm0, %v518_v13, 0.0  ;;  %v528_v61 = vsel %vm520_vm0, %v519_v41, 0.0 }
  0xcb   : > { %v522_v42 = vrot.slane %v521_v12, 4  ;;  %v529_v44 = vrot.slane %v528_v61, 4 }
  0xcd   : > { %v523_v45 = vadd.f32 %v522_v42, %v521_v12  ;;  %v530_v46 = vadd.f32 %v529_v44, %v528_v61 }
  0xcf   : > { %v524_v19 = vrot.slane %v523_v45, 2  ;;  %v531_v18 = vrot.slane %v530_v46, 2 }
  0xd1   : > { %v525_v30 = vadd.f32 %v524_v19, %v523_v45  ;;  %v532_v47 = vadd.f32 %v531_v18, %v530_v46 }
  0xd3   : > { %v526_v48 = vrot.slane %v525_v30, 1  ;;  %v533_v16 = vrot.slane %v532_v47, 1 }
  0xd5   : > { %v527_v50 = vadd.f32 %v526_v48, %v525_v30  ;;  %v534_v43 = vadd.f32 %v533_v16, %v532_v47 }
  0xd7   : > { %v536_v51 = vadd.f32 %v535_v49, %v527_v50  ;;  %v537_v52 = vadd.f32 %v535_v49, %v534_v43 }
  0xd9   : > { %v718_v53 = vmul.f32 -1.442695, %v536_v51  ;;  %v719_v54 = vmul.f32 -1.442695, %v537_v52 }
  0xdb   : > { %789 = vpow2.f32 %v718_v53 }
  0xdc   : > { %791 = vpow2.f32 %v719_v54 }
  0xe5   : > { %v790_v55 = vpop.eup %789 }
  0xe6   : > { %v792_v2 = vpop.eup %791  ;;  %v544_v56 = vadd.f32 1.0, %v790_v55 }
  0xe7   : > { %v545_v57 = vadd.f32 1.0, %v792_v2 }
  0xe8   : > { %793 = vrcp.f32 %v544_v56 }
  0xe9   : > { %795 = vrcp.f32 %v545_v57 }
  0xf2   : > { %v794_v63 = vpop.eup %793 }
  0xf3   : > { %v796_v1 = vpop.eup %795 }
  0xf4   : > { %v552_v3 = vcombine.low %v794_v63, %v796_v1 }
  0xf6   : > { %v559_v4 = vrot.slane %v552_v3, %v558_v0  ;;  %v574_v5 = vmul.f32 %v552_v3, %v1009_v6 }
  0xf8   : > { %575 = vst [vmem:[%s222_s12] sm:$0xff] %v574_v5  ;;  %v566_v7 = vrot.slane %v559_v4, %v558_v0 }
  0xf9   : > { %810 = shalt.err (!%p807_p3)
}
  0xfa   : > { %s811_s11 = scalar_lea.hbm %s1261_s19, 128  ;;  %s815_s17 = scalar_lea.hbm %s1345_s4, 256 }
  0xfb   : > { %p812_p4 = scmp.ne.s32.totalorder %s1261_s19, %s811_s11  ;;  %p816_p9 = scmp.lt.u32.totalorder %s1261_s19, %s1345_s4 }
  0xfc   : > { %p817_p10 = scmp.lt.u32.totalorder %s815_s17, %s811_s11  ;;  %p819_p12 = scmp.lt.u32.totalorder %s811_s11, %s1261_s19 }
  0xfd   : > { %p813_p7 = pnand %p812_p4, %p977_p5 }
  0xfe   : > { %p818_p11 = por %p817_p10, %p816_p9 }
  0xff   : > { %p814_p8 = pneg %p813_p7 }
 0x100   : > { %p820_p13 = por %p819_p12, %p818_p11 }
 0x102   : > { %p821_p0 = pnand %p820_p13, %p814_p8 }
 0x104   : > { %824 = shalt.err (!%p821_p0)
}
 0x105   : > { %731 = dma.vmem_to_hbm [thread:$0]  (%p977_p5), %s1263_s13, 128, %s1261_s19, %s577_s27   ;;  %572 = vst.msk [vmem:[%s1254_s15] sm:$0x3] %vm1266_vm2, %v566_v7 }
 0x106   : > { %s582_s24 = scalar_lea.sflag [#allocation6], %s1247_s8  ;;  %s825_s6 = scalar_lea.vmem %s1275_s16, 32 }
 0x107   : > { %p826_p1 = scmp.ne.s32.totalorder %s1275_s16, %s825_s6  ;;  %s905_s7 = smov [#allocation5]  }
 0x108   : > { %s829_s9 = sshll.u32 %s905_s7, 4  ;;  %s830_s9 = int_to_ptr.vmem [resolvable:$false] %s829_s9 }
 0x109   : > { %p827_p2 = pnand %p826_p1, %p977_p5  ;;  %s831_s10 = scalar_lea.vmem %s830_s9, 64 }
 0x10a   : > { %p832_p4 = scmp.lt.s32.totalorder %s1275_s16, %s830_s9  ;;  %p833_p7 = scmp.lt.s32.totalorder %s831_s10, %s825_s6 }
 0x10b   : > { %p828_p3 = pneg %p827_p2 }
 0x10c   : > { %p834_p8 = por %p833_p7, %p832_p4 }
 0x10e   : > { %p835_p9 = pnand %p834_p8, %p828_p3 }
 0x110   : > { %838 = shalt.err (!%p835_p9)
}
 0x111   : > { %s839_s8 = scalar_lea.hbm %s1273_s26, 32  ;;  %s843_s19 = scalar_lea.hbm %s1346_s5, 64 }
 0x112   : > { %p840_p10 = scmp.ne.s32.totalorder %s1273_s26, %s839_s8  ;;  %p844_p13 = scmp.lt.u32.totalorder %s1273_s26, %s1346_s5 }
 0x113   : > { %p845_p0 = scmp.lt.u32.totalorder %s843_s19, %s839_s8  ;;  %p847_p2 = scmp.lt.u32.totalorder %s839_s8, %s1273_s26 }
 0x114   : > { %p841_p11 = pnand %p840_p10, %p977_p5 }
 0x115   : > { %p846_p1 = por %p845_p0, %p844_p13 }
 0x116   : > { %p842_p12 = pneg %p841_p11 }
 0x117   : > { %p848_p3 = por %p847_p2, %p846_p1 }
 0x119   : > { %p849_p4 = pnand %p848_p3, %p842_p12 }
 0x11b   : > { %852 = shalt.err (!%p849_p4)
}
 0x11c   : > { %732 = dma.vmem_to_hbm [thread:$0]  (%p977_p5), %s1275_s16, 32, %s1273_s26, %s582_s24  }
 0x11d PF: > { %p742_p7 = scmp.ge.s32.totalorder %s891_s23, 2  ;;  %s622_s12 = sand.u32 1, %s879_s20  }
 0x11e   : > { %s623_s14 = scalar_lea.sflag [#allocation4], %s622_s12 }
 0x11f   : > { %p736_p8 = pnand %p742_p7, %p981_p6 }
 0x121   : > { %870 = dma.done.wait (!%p736_p8), %s623_s14, 128  }
 0x122   : > { %872 = vsyncadd (!%p736_p8), %s623_s14, 4294967168  ;;  %s632_s17 = scalar_lea.sflag [#allocation6], %s622_s12 }
 0x123   : > { %874 = dma.done.wait (!%p736_p8), %s632_s17, 32  }
 0x124   : > { %876 = vsyncadd (!%p736_p8), %s632_s17, 4294967264  ;;  %p20_p5 = scmp.ge.s32.totalorder %s964_s25, 4   ;;  %s1379_s20 = smov %s883_s21 }
 0x125   : > { %s1380_s21 = smov %s887_s22  ;;  %s1381_s22 = smov %s975_s28 }
 0x126   : > { %s1382_s23 = smov %s964_s25  ;;  %22 = sbr.rel (!%p20_p5) target bundleno = 7 (0x7), region = 97 }
 0x12d   :  { %637 = vsyncpa [#allocation4], 1 }
 0x12e   :  { %639 = vsyncpa [#allocation4 + $0x1], 1 }
 0x12f   :  { %640 = vsyncpa [#allocation6], 1 }
 0x130   :  { %642 = vsyncpa [#allocation6 + $0x1], 1 }

</bundles_post_ra>
